<compile_context>
chip_gen: v7x
topology: tpu7x:2x2x1
jax: 0.10.0
libtpu: 0.0.40
codegen_flags: <defaults>
</compile_context>

<pallas_src>
import functools

import jax
import jax.numpy as jnp
from jax.experimental import pallas as pl
from jax.experimental.pallas import tpu as pltpu

_EPS = 1e-5


def _round_up(x, m):
    return (x + m - 1) // m * m


# ----------------------------- Pallas kernels ------------------------------ #

def _conv_stats_kernel(x_ref, w_ref, mask_ref, y_ref, stats_ref, *, Wp, Lout):
    """One image: 3x3 same-conv as ONE fused (Cout,9*Cin) x (9*Cin,Lout) dot.

    x_ref:     (1, Cin, Lin)   bf16  flat padded canvas ((H+2)*(W+2), flat-padded)
    w_ref:     (Cout, 9*Cin)   bf16  weights, column index = (ky*3+kx)*Cin + ci
    mask_ref:  (1, Lout)       f32   1.0 on valid output positions, else 0.0
    y_ref:     (1, Cout, Lout) f32   conv output on the padded-width flat grid
    stats_ref: (1, Cout, 2)    f32   per-image [sum(y), sum(y*y)] over valid pos
    """
    x = x_ref[0]                                         # (Cin, Lin) bf16
    taps = []
    for ky in range(3):
        for kx in range(3):
            d = ky * Wp + kx                             # flat tap offset
            taps.append(x[:, d:d + Lout])                # lane slice, no reshape
    xstack = jnp.concatenate(taps, axis=0)               # (9*Cin, Lout) bf16

    acc = jnp.dot(w_ref[...], xstack,
                  preferred_element_type=jnp.float32)    # (Cout, Lout) f32
    y_ref[0] = acc

    m = mask_ref[...]                                    # (1, Lout) f32
    s = jnp.sum(acc * m, axis=1, keepdims=True)          # (Cout, 1)
    ss = jnp.sum(acc * acc * m, axis=1, keepdims=True)   # (Cout, 1)
    stats_ref[0] = jnp.concatenate([s, ss], axis=1)      # (Cout, 2)


def _bn_relu_kernel(y_ref, scale_ref, shift_ref, o_ref):
    """Fused affine-normalize + ReLU; per-channel scale/shift broadcast over lanes."""
    o_ref[...] = jnp.maximum(y_ref[...] * scale_ref[...] + shift_ref[...], 0.0)


# ------------------------------ wrappers ------------------------------------ #

def _conv3x3_stats(xin, wmat, mask, *, Cout, Wp, Lout):
    """xin: (N, Cin, Lin) bf16 canvas.  Returns y (N,Cout,Lout) f32 and per-image
    masked stats (N, Cout, 2) f32."""
    N, Cin, Lin = xin.shape
    est = (2 * (Cin * Lin * 2 + Cout * 9 * Cin * 2 + Lout * 4
                + Cout * Lout * 4 + Cout * 8)
           + 9 * Cin * Lout * 2 + Cout * Lout * 4)
    vmem_limit = int(min(max(2 * est, 32 * 2**20), 112 * 2**20))

    kernel = functools.partial(_conv_stats_kernel, Wp=Wp, Lout=Lout)
    y, stats = pl.pallas_call(
        kernel,
        out_shape=(jax.ShapeDtypeStruct((N, Cout, Lout), jnp.float32),
                   jax.ShapeDtypeStruct((N, Cout, 2), jnp.float32)),
        grid=(N,),
        in_specs=[
            pl.BlockSpec((1, Cin, Lin), lambda n: (n, 0, 0)),
            pl.BlockSpec((Cout, 9 * Cin), lambda n: (0, 0)),
            pl.BlockSpec((1, Lout), lambda n: (0, 0)),
        ],
        out_specs=(
            pl.BlockSpec((1, Cout, Lout), lambda n: (n, 0, 0)),
            pl.BlockSpec((1, Cout, 2), lambda n: (n, 0, 0)),
        ),
        compiler_params=pltpu.CompilerParams(
            dimension_semantics=("parallel",),
            vmem_limit_bytes=vmem_limit),
    )(xin, wmat, mask)
    return y, stats


def _lane_tile(L, C, target_bytes=2 << 20):
    """Largest multiple-of-128 divisor of L with a (C, tile) f32 block <= target."""
    cap = max(128, (target_bytes // max(C * 4, 1)) // 128 * 128)
    t = min(L, cap)
    while t > 128 and L % t != 0:
        t -= 128
    return t if L % t == 0 else 128          # L is always a multiple of 128


def _bn_relu(y, scale, shift):
    """y: (N, C, L) f32, L multiple of 128.  Returns max(y*scale + shift, 0)."""
    N, C, L = y.shape
    lt = _lane_tile(L, C)
    sc = scale.reshape(1, C, 1).astype(jnp.float32)
    sh = shift.reshape(1, C, 1).astype(jnp.float32)
    return pl.pallas_call(
        _bn_relu_kernel,
        out_shape=jax.ShapeDtypeStruct((N, C, L), jnp.float32),
        grid=(N, L // lt),
        in_specs=[
            pl.BlockSpec((1, C, lt), lambda n, j: (n, 0, j)),
            pl.BlockSpec((1, C, 1), lambda n, j: (0, 0, 0)),
            pl.BlockSpec((1, C, 1), lambda n, j: (0, 0, 0)),
        ],
        out_specs=pl.BlockSpec((1, C, lt), lambda n, j: (n, 0, j)),
        input_output_aliases={0: 0},          # reuse y's HBM buffer in place
        compiler_params=pltpu.CompilerParams(
            dimension_semantics=("parallel", "parallel")),
    )(y, sc, sh)


def _to_canvas(a_nchw, Lin):
    """(N, C, H, W) -> (N, C, Lin) bf16: zero-pad H/W by 1, flatten, flat-pad."""
    N, C, H, W = a_nchw.shape
    xp = jnp.pad(a_nchw, ((0, 0), (0, 0), (1, 1), (1, 1)))
    xp = xp.reshape(N, C, (H + 2) * (W + 2))
    xp = jnp.pad(xp, ((0, 0), (0, 0), (0, Lin - (H + 2) * (W + 2))))
    return xp.astype(jnp.bfloat16)


def _prep_weights(w_oihw):
    """(Cout, Cin, 3, 3) -> (Cout, 9*Cin) bf16; column = (ky*3+kx)*Cin + ci."""
    Cout, Cin = w_oihw.shape[:2]
    return (jnp.transpose(w_oihw, (0, 2, 3, 1))
            .reshape(Cout, 9 * Cin).astype(jnp.bfloat16))


def _bn_scale_shift(stats, gamma, beta, count, eps):
    s = jnp.sum(stats[:, :, 0], axis=0)                  # (Cout,)
    ss = jnp.sum(stats[:, :, 1], axis=0)                 # (Cout,)
    mean = s / count
    var = jnp.maximum(ss / count - mean * mean, 0.0)     # biased var, clamped
    invstd = jax.lax.rsqrt(var + eps)
    scale = gamma * invstd
    shift = beta - mean * scale
    return scale, shift


# ------------------------------ layer / forward ----------------------------- #

@jax.jit
def conv_block_forward(x_nchw, params):
    """Matches conv_block.forward: NCHW float in -> NCHW float out.

    Conv biases b1/b2 are intentionally unused: each conv is followed by
    training-mode BatchNorm (batch statistics), under which a per-channel
    constant shift cancels exactly.
    """
    x = x_nchw.astype(jnp.float32)
    N, Cin, H, W = x.shape
    C1 = params["w1"].shape[0]
    C2 = params["w2"].shape[0]

    Wp = W + 2
    Lout = _round_up(H * Wp, 128)                # lane-aligned flat output length
    Lin = _round_up(Lout + 2 * Wp + 2, 128)      # lane-aligned flat canvas length
    count = N * H * W

    # Validity mask on the padded-width output grid (shared by both layers).
    q = jnp.arange(Lout)
    mask = (((q % Wp) < W) & (q < H * Wp)).astype(jnp.float32).reshape(1, Lout)

    # ---- layer 1: conv + batch statistics --------------------------------- #
    xin1 = _to_canvas(x, Lin)
    y1, st1 = _conv3x3_stats(xin1, _prep_weights(params["w1"]), mask,
                             Cout=C1, Wp=Wp, Lout=Lout)
    sc1, sh1 = _bn_scale_shift(st1, params["g1"], params["be1"], count, _EPS)

    # ---- fused BN+ReLU + repack into layer-2's bf16 canvas (one XLA pass) -- #
    a1 = y1[:, :, :H * Wp].reshape(N, C1, H, Wp)[:, :, :, :W]
    a1 = jnp.maximum(a1 * sc1[None, :, None, None] + sh1[None, :, None, None], 0.0)
    xin2 = _to_canvas(a1, Lin)

    # ---- layer 2: conv + batch statistics --------------------------------- #
    y2, st2 = _conv3x3_stats(xin2, _prep_weights(params["w2"]), mask,
                             Cout=C2, Wp=Wp, Lout=Lout)
    sc2, sh2 = _bn_scale_shift(st2, params["g2"], params["be2"], count, _EPS)

    # ---- final BN+ReLU (lane-dense Pallas) + extract real pixels ----------- #
    o = _bn_relu(y2, sc2, sh2)                           # (N, C2, Lout) f32
    out = o[:, :, :H * Wp].reshape(N, C2, H, Wp)[:, :, :, :W]
    return out                                           # (N, C2, H, W) f32, NCHW


def init_conv_block_params(key, ch_in, ch_out):
    """Deterministic parameter init mirroring the module's shapes."""
    k1, k2, k3, k4 = jax.random.split(key, 4)
    s1 = 1.0 / jnp.sqrt(ch_in * 9.0)
    s2 = 1.0 / jnp.sqrt(ch_out * 9.0)
    return {
        "w1": jax.random.normal(k1, (ch_out, ch_in, 3, 3), jnp.float32) * s1,
        "b1": jax.random.normal(k2, (ch_out,), jnp.float32) * s1,
        "g1": jnp.ones((ch_out,), jnp.float32),      # BatchNorm weight
        "be1": jnp.zeros((ch_out,), jnp.float32),    # BatchNorm bias
        "w2": jax.random.normal(k3, (ch_out, ch_out, 3, 3), jnp.float32) * s2,
        "b2": jax.random.normal(k4, (ch_out,), jnp.float32) * s2,
        "g2": jnp.ones((ch_out,), jnp.float32),
        "be2": jnp.zeros((ch_out,), jnp.float32),
    }


# ------------------------------ reference ----------------------------------- #

def _reference_forward(x_nchw, params, eps=_EPS, conv_dtype=jnp.float32):
    """Pure-JAX reference.  conv_dtype=bfloat16 reproduces the kernel's MXU
    precision (bf16 operands, f32 accumulation); float32 is exact PyTorch math.
    Conv bias is kept here — training-mode BN cancels it, which the comparison
    validates."""
    def layer(x, w, b, g, be):
        y = jax.lax.conv_general_dilated(
            x.astype(conv_dtype), w.astype(conv_dtype),
            window_strides=(1, 1), padding=((1, 1), (1, 1)),
            dimension_numbers=("NCHW", "OIHW", "NCHW"),
            preferred_element_type=jnp.float32)
        y = y + b.reshape(1, -1, 1, 1)
        mean = jnp.mean(y, axis=(0, 2, 3), keepdims=True)
        var = jnp.mean((y - mean) ** 2, axis=(0, 2, 3), keepdims=True)
        y = (y - mean) * jax.lax.rsqrt(var + eps)
        y = y * g.reshape(1, -1, 1, 1) + be.reshape(1, -1, 1, 1)
        return jnp.maximum(y, 0.0)

    x = layer(x_nchw.astype(jnp.float32),
              params["w1"], params["b1"], params["g1"], params["be1"])
    x = layer(x, params["w2"], params["b2"], params["g2"], params["be2"])
    return x


# --------------------------------- main -------------------------------------- #

if __name__ == "__main__":
    ch_in, ch_out = 4, 8
    key = jax.random.PRNGKey(0)
    kx, kp = jax.random.split(key)

    x = jax.random.normal(kx, (2, ch_in, 16, 16), jnp.float32)   # NCHW like PyTorch
    params = init_conv_block_params(kp, ch_in, ch_out)

    out = conv_block_forward(x, params)
    out = jax.block_until_ready(out)
    assert out.shape == (2, ch_out, 16, 16)

    # Tight check against a reference with the same bf16-operand / f32-accumulate
    # matmul precision as the kernel's MXU path.
    ref_matched = _reference_forward(x, params, conv_dtype=jnp.bfloat16)
    assert jnp.allclose(out, ref_matched, rtol=2e-2, atol=2e-2), \
        "mismatch vs bf16-precision JAX reference"

    # Looser sanity check against the pure-f32 reference; the gap is the expected
    # bf16 operand-rounding budget across two conv layers.
    ref_f32 = _reference_forward(x, params, conv_dtype=jnp.float32)
    assert jnp.allclose(out, ref_f32, rtol=1e-1, atol=1e-1), \
        "mismatch vs f32 JAX reference beyond bf16 rounding budget"

    print("KERNEL_OK")
</pallas_src>

<mosaic_0001>
module attributes {stable_mosaic.version = 11 : i64} {
  func.func @_conv_stats_kernel(%arg0: i32, %arg1: memref<1x4x512xbf16, #tpu.memory_space<vmem>>, %arg2: memref<8x36xbf16, #tpu.memory_space<vmem>>, %arg3: memref<1x384xf32, #tpu.memory_space<vmem>>, %arg4: memref<1x8x384xf32, #tpu.memory_space<vmem>>, %arg5: memref<1x8x2xf32, #tpu.memory_space<vmem>>) attributes {dimension_semantics = [#tpu.dimension_semantics<parallel>], iteration_bounds = array<i64: 2>, scalar_prefetch = 0 : i64, scratch_operands = 0 : i64, tpu.core_type = #tpu.core_type<tc>, window_params = [{transform_indices = @transform_0, window_bounds = array<i64: 1, 4, 512>}, {pipeline_mode = #tpu.pipeline_mode<synchronous>, transform_indices = @transform_1, window_bounds = array<i64: 8, 36>}, {pipeline_mode = #tpu.pipeline_mode<synchronous>, transform_indices = @transform_2, window_bounds = array<i64: 1, 384>}, {transform_indices = @transform_3, window_bounds = array<i64: 1, 8, 384>}, {transform_indices = @transform_4, window_bounds = array<i64: 1, 8, 2>}]} {
    %c0 = arith.constant 0 : index
    %c0_0 = arith.constant 0 : index
    %c0_1 = arith.constant 0 : index
    %0 = vector.load %arg1[%c0, %c0_0, %c0_1] : memref<1x4x512xbf16, #tpu.memory_space<vmem>>, vector<1x4x512xbf16>
    %1 = vector.shape_cast %0 : vector<1x4x512xbf16> to vector<4x512xbf16>
    %2 = vector.extract_strided_slice %1 {offsets = [0, 0], sizes = [4, 384], strides = [1, 1]} : vector<4x512xbf16> to vector<4x384xbf16>
    %3 = vector.extract_strided_slice %1 {offsets = [0, 1], sizes = [4, 384], strides = [1, 1]} : vector<4x512xbf16> to vector<4x384xbf16>
    %4 = vector.extract_strided_slice %1 {offsets = [0, 2], sizes = [4, 384], strides = [1, 1]} : vector<4x512xbf16> to vector<4x384xbf16>
    %5 = vector.extract_strided_slice %1 {offsets = [0, 18], sizes = [4, 384], strides = [1, 1]} : vector<4x512xbf16> to vector<4x384xbf16>
    %6 = vector.extract_strided_slice %1 {offsets = [0, 19], sizes = [4, 384], strides = [1, 1]} : vector<4x512xbf16> to vector<4x384xbf16>
    %7 = vector.extract_strided_slice %1 {offsets = [0, 20], sizes = [4, 384], strides = [1, 1]} : vector<4x512xbf16> to vector<4x384xbf16>
    %8 = vector.extract_strided_slice %1 {offsets = [0, 36], sizes = [4, 384], strides = [1, 1]} : vector<4x512xbf16> to vector<4x384xbf16>
    %9 = vector.extract_strided_slice %1 {offsets = [0, 37], sizes = [4, 384], strides = [1, 1]} : vector<4x512xbf16> to vector<4x384xbf16>
    %10 = vector.extract_strided_slice %1 {offsets = [0, 38], sizes = [4, 384], strides = [1, 1]} : vector<4x512xbf16> to vector<4x384xbf16>
    %11 = tpu.concatenate %2, %3, %4, %5, %6, %7, %8, %9, %10 in 0 : vector<4x384xbf16>, vector<4x384xbf16>, vector<4x384xbf16>, vector<4x384xbf16>, vector<4x384xbf16>, vector<4x384xbf16>, vector<4x384xbf16>, vector<4x384xbf16>, vector<4x384xbf16> -> vector<36x384xbf16>
    %c0_2 = arith.constant 0 : index
    %c0_3 = arith.constant 0 : index
    %12 = vector.load %arg2[%c0_2, %c0_3] : memref<8x36xbf16, #tpu.memory_space<vmem>>, vector<8x36xbf16>
    %cst = arith.constant dense<0.000000e+00> : vector<8x384xf32>
    %13 = tpu.matmul %12, %11, %cst {dimension_numbers = #tpu.dot_dimension_numbers<[1], [0], [0], [1], [0, 0, 1, 1], [], []>} : vector<8x36xbf16>, vector<36x384xbf16>, vector<8x384xf32> -> vector<8x384xf32>
    %c0_4 = arith.constant 0 : index
    %c0_5 = arith.constant 0 : index
    %c0_6 = arith.constant 0 : index
    %14 = vector.load %arg4[%c0_4, %c0_5, %c0_6] : memref<1x8x384xf32, #tpu.memory_space<vmem>>, vector<1x8x384xf32>
    %15 = vector.shape_cast %14 : vector<1x8x384xf32> to vector<8x384xf32>
    %16 = vector.shape_cast %13 : vector<8x384xf32> to vector<1x8x384xf32>
    tpu.vector_store %arg4[%c0_4, %c0_5, %c0_6], %16 {strides = array<i32>} : memref<1x8x384xf32, #tpu.memory_space<vmem>>, vector<1x8x384xf32>,
    %c0_7 = arith.constant 0 : index
    %c0_8 = arith.constant 0 : index
    %17 = vector.load %arg3[%c0_7, %c0_8] : memref<1x384xf32, #tpu.memory_space<vmem>>, vector<1x384xf32>
    %18 = vector.broadcast %17 : vector<1x384xf32> to vector<8x384xf32>
    %19 = arith.mulf %13, %18 : vector<8x384xf32>
    %cst_9 = arith.constant dense<0.000000e+00> : vector<8xf32>
    %20 = vector.multi_reduction <add>, %19, %cst_9 [1] : vector<8x384xf32> to vector<8xf32>
    %21 = vector.shape_cast %20 : vector<8xf32> to vector<8x1xf32>
    %22 = arith.mulf %13, %13 : vector<8x384xf32>
    %23 = vector.broadcast %17 : vector<1x384xf32> to vector<8x384xf32>
    %24 = arith.mulf %22, %23 : vector<8x384xf32>
    %cst_10 = arith.constant dense<0.000000e+00> : vector<8xf32>
    %25 = vector.multi_reduction <add>, %24, %cst_10 [1] : vector<8x384xf32> to vector<8xf32>
    %26 = vector.shape_cast %25 : vector<8xf32> to vector<8x1xf32>
    %27 = tpu.concatenate %21, %26 in 1 : vector<8x1xf32>, vector<8x1xf32> -> vector<8x2xf32>
    %c0_11 = arith.constant 0 : index
    %c0_12 = arith.constant 0 : index
    %c0_13 = arith.constant 0 : index
    %28 = vector.load %arg5[%c0_11, %c0_12, %c0_13] : memref<1x8x2xf32, #tpu.memory_space<vmem>>, vector<1x8x2xf32>
    %29 = vector.shape_cast %28 : vector<1x8x2xf32> to vector<8x2xf32>
    %30 = vector.shape_cast %27 : vector<8x2xf32> to vector<1x8x2xf32>
    tpu.vector_store %arg5[%c0_11, %c0_12, %c0_13], %30 {strides = array<i32>} : memref<1x8x2xf32, #tpu.memory_space<vmem>>, vector<1x8x2xf32>,
    return
  }
  func.func @transform_0(%arg0: i32) -> (i32, i32, i32) {
    %c0_i32 = arith.constant 0 : i32
    %c0_i32_0 = arith.constant 0 : i32
    %c0_i32_1 = arith.constant 0 : i32
    return %arg0, %c0_i32, %c0_i32_0 : i32, i32, i32
  }
  func.func @transform_1(%arg0: i32) -> (i32, i32) {
    %c0_i32 = arith.constant 0 : i32
    %c0_i32_0 = arith.constant 0 : i32
    %c0_i32_1 = arith.constant 0 : i32
    return %c0_i32, %c0_i32_0 : i32, i32
  }
  func.func @transform_2(%arg0: i32) -> (i32, i32) {
    %c0_i32 = arith.constant 0 : i32
    %c0_i32_0 = arith.constant 0 : i32
    %c0_i32_1 = arith.constant 0 : i32
    return %c0_i32, %c0_i32_0 : i32, i32
  }
  func.func @transform_3(%arg0: i32) -> (i32, i32, i32) {
    %c0_i32 = arith.constant 0 : i32
    %c0_i32_0 = arith.constant 0 : i32
    %c0_i32_1 = arith.constant 0 : i32
    return %arg0, %c0_i32, %c0_i32_0 : i32, i32, i32
  }
  func.func @transform_4(%arg0: i32) -> (i32, i32, i32) {
    %c0_i32 = arith.constant 0 : i32
    %c0_i32_0 = arith.constant 0 : i32
    %c0_i32_1 = arith.constant 0 : i32
    return %arg0, %c0_i32, %c0_i32_0 : i32, i32, i32
  }
}

module attributes {stable_mosaic.version = 11 : i64} {
  func.func @_bn_relu_kernel(%arg0: i32, %arg1: i32, %arg2: memref<1x8x384xf32, #tpu.memory_space<vmem>>, %arg3: memref<1x8x1xf32, #tpu.memory_space<vmem>>, %arg4: memref<1x8x1xf32, #tpu.memory_space<vmem>>, %arg5: memref<1x8x384xf32, #tpu.memory_space<vmem>>) attributes {dimension_semantics = [#tpu.dimension_semantics<parallel>, #tpu.dimension_semantics<parallel>], iteration_bounds = array<i64: 2, 1>, scalar_prefetch = 0 : i64, scratch_operands = 0 : i64, tpu.core_type = #tpu.core_type<tc>, window_params = [{transform_indices = @transform_0, window_bounds = array<i64: 1, 8, 384>}, {pipeline_mode = #tpu.pipeline_mode<synchronous>, transform_indices = @transform_1, window_bounds = array<i64: 1, 8, 1>}, {pipeline_mode = #tpu.pipeline_mode<synchronous>, transform_indices = @transform_2, window_bounds = array<i64: 1, 8, 1>}, {transform_indices = @transform_3, window_bounds = array<i64: 1, 8, 384>}]} {
    %c0 = arith.constant 0 : index
    %c0_0 = arith.constant 0 : index
    %c0_1 = arith.constant 0 : index
    %0 = vector.load %arg2[%c0, %c0_0, %c0_1] : memref<1x8x384xf32, #tpu.memory_space<vmem>>, vector<1x8x384xf32>
    %c0_2 = arith.constant 0 : index
    %c0_3 = arith.constant 0 : index
    %c0_4 = arith.constant 0 : index
    %1 = vector.load %arg3[%c0_2, %c0_3, %c0_4] : memref<1x8x1xf32, #tpu.memory_space<vmem>>, vector<1x8x1xf32>
    %2 = vector.broadcast %1 : vector<1x8x1xf32> to vector<1x8x384xf32>
    %3 = arith.mulf %0, %2 : vector<1x8x384xf32>
    %c0_5 = arith.constant 0 : index
    %c0_6 = arith.constant 0 : index
    %c0_7 = arith.constant 0 : index
    %4 = vector.load %arg4[%c0_5, %c0_6, %c0_7] : memref<1x8x1xf32, #tpu.memory_space<vmem>>, vector<1x8x1xf32>
    %5 = vector.broadcast %4 : vector<1x8x1xf32> to vector<1x8x384xf32>
    %6 = arith.addf %3, %5 : vector<1x8x384xf32>
    %cst = arith.constant 0.000000e+00 : f32
    %7 = vector.broadcast %cst : f32 to vector<1x8x384xf32>
    %8 = arith.maximumf %6, %7 : vector<1x8x384xf32>
    %c0_8 = arith.constant 0 : index
    %c0_9 = arith.constant 0 : index
    %c0_10 = arith.constant 0 : index
    %9 = vector.load %arg5[%c0_8, %c0_9, %c0_10] : memref<1x8x384xf32, #tpu.memory_space<vmem>>, vector<1x8x384xf32>
    tpu.vector_store %arg5[%c0_8, %c0_9, %c0_10], %8 {strides = array<i32>} : memref<1x8x384xf32, #tpu.memory_space<vmem>>, vector<1x8x384xf32>,
    return
  }
  func.func @transform_0(%arg0: i32, %arg1: i32) -> (i32, i32, i32) {
    %c0_i32 = arith.constant 0 : i32
    %c0_i32_0 = arith.constant 0 : i32
    return %arg0, %c0_i32, %arg1 : i32, i32, i32
  }
  func.func @transform_1(%arg0: i32, %arg1: i32) -> (i32, i32, i32) {
    %c0_i32 = arith.constant 0 : i32
    %c0_i32_0 = arith.constant 0 : i32
    %c0_i32_1 = arith.constant 0 : i32
    %c0_i32_2 = arith.constant 0 : i32
    return %c0_i32, %c0_i32_0, %c0_i32_1 : i32, i32, i32
  }
  func.func @transform_2(%arg0: i32, %arg1: i32) -> (i32, i32, i32) {
    %c0_i32 = arith.constant 0 : i32
    %c0_i32_0 = arith.constant 0 : i32
    %c0_i32_1 = arith.constant 0 : i32
    %c0_i32_2 = arith.constant 0 : i32
    return %c0_i32, %c0_i32_0, %c0_i32_1 : i32, i32, i32
  }
  func.func @transform_3(%arg0: i32, %arg1: i32) -> (i32, i32, i32) {
    %c0_i32 = arith.constant 0 : i32
    %c0_i32_0 = arith.constant 0 : i32
    return %arg0, %c0_i32, %arg1 : i32, i32, i32
  }
}

module attributes {stable_mosaic.version = 11 : i64} {
  func.func @_conv_stats_kernel(%arg0: i32, %arg1: memref<1x8x512xbf16, #tpu.memory_space<vmem>>, %arg2: memref<8x72xbf16, #tpu.memory_space<vmem>>, %arg3: memref<1x384xf32, #tpu.memory_space<vmem>>, %arg4: memref<1x8x384xf32, #tpu.memory_space<vmem>>, %arg5: memref<1x8x2xf32, #tpu.memory_space<vmem>>) attributes {dimension_semantics = [#tpu.dimension_semantics<parallel>], iteration_bounds = array<i64: 2>, scalar_prefetch = 0 : i64, scratch_operands = 0 : i64, tpu.core_type = #tpu.core_type<tc>, window_params = [{transform_indices = @transform_0, window_bounds = array<i64: 1, 8, 512>}, {pipeline_mode = #tpu.pipeline_mode<synchronous>, transform_indices = @transform_1, window_bounds = array<i64: 8, 72>}, {pipeline_mode = #tpu.pipeline_mode<synchronous>, transform_indices = @transform_2, window_bounds = array<i64: 1, 384>}, {transform_indices = @transform_3, window_bounds = array<i64: 1, 8, 384>}, {transform_indices = @transform_4, window_bounds = array<i64: 1, 8, 2>}]} {
    %c0 = arith.constant 0 : index
    %c0_0 = arith.constant 0 : index
    %c0_1 = arith.constant 0 : index
    %0 = vector.load %arg1[%c0, %c0_0, %c0_1] : memref<1x8x512xbf16, #tpu.memory_space<vmem>>, vector<1x8x512xbf16>
    %1 = vector.shape_cast %0 : vector<1x8x512xbf16> to vector<8x512xbf16>
    %2 = vector.extract_strided_slice %1 {offsets = [0, 0], sizes = [8, 384], strides = [1, 1]} : vector<8x512xbf16> to vector<8x384xbf16>
    %3 = vector.extract_strided_slice %1 {offsets = [0, 1], sizes = [8, 384], strides = [1, 1]} : vector<8x512xbf16> to vector<8x384xbf16>
    %4 = vector.extract_strided_slice %1 {offsets = [0, 2], sizes = [8, 384], strides = [1, 1]} : vector<8x512xbf16> to vector<8x384xbf16>
    %5 = vector.extract_strided_slice %1 {offsets = [0, 18], sizes = [8, 384], strides = [1, 1]} : vector<8x512xbf16> to vector<8x384xbf16>
    %6 = vector.extract_strided_slice %1 {offsets = [0, 19], sizes = [8, 384], strides = [1, 1]} : vector<8x512xbf16> to vector<8x384xbf16>
    %7 = vector.extract_strided_slice %1 {offsets = [0, 20], sizes = [8, 384], strides = [1, 1]} : vector<8x512xbf16> to vector<8x384xbf16>
    %8 = vector.extract_strided_slice %1 {offsets = [0, 36], sizes = [8, 384], strides = [1, 1]} : vector<8x512xbf16> to vector<8x384xbf16>
    %9 = vector.extract_strided_slice %1 {offsets = [0, 37], sizes = [8, 384], strides = [1, 1]} : vector<8x512xbf16> to vector<8x384xbf16>
    %10 = vector.extract_strided_slice %1 {offsets = [0, 38], sizes = [8, 384], strides = [1, 1]} : vector<8x512xbf16> to vector<8x384xbf16>
    %11 = tpu.concatenate %2, %3, %4, %5, %6, %7, %8, %9, %10 in 0 : vector<8x384xbf16>, vector<8x384xbf16>, vector<8x384xbf16>, vector<8x384xbf16>, vector<8x384xbf16>, vector<8x384xbf16>, vector<8x384xbf16>, vector<8x384xbf16>, vector<8x384xbf16> -> vector<72x384xbf16>
    %c0_2 = arith.constant 0 : index
    %c0_3 = arith.constant 0 : index
    %12 = vector.load %arg2[%c0_2, %c0_3] : memref<8x72xbf16, #tpu.memory_space<vmem>>, vector<8x72xbf16>
    %cst = arith.constant dense<0.000000e+00> : vector<8x384xf32>
    %13 = tpu.matmul %12, %11, %cst {dimension_numbers = #tpu.dot_dimension_numbers<[1], [0], [0], [1], [0, 0, 1, 1], [], []>} : vector<8x72xbf16>, vector<72x384xbf16>, vector<8x384xf32> -> vector<8x384xf32>
    %c0_4 = arith.constant 0 : index
    %c0_5 = arith.constant 0 : index
    %c0_6 = arith.constant 0 : index
    %14 = vector.load %arg4[%c0_4, %c0_5, %c0_6] : memref<1x8x384xf32, #tpu.memory_space<vmem>>, vector<1x8x384xf32>
    %15 = vector.shape_cast %14 : vector<1x8x384xf32> to vector<8x384xf32>
    %16 = vector.shape_cast %13 : vector<8x384xf32> to vector<1x8x384xf32>
    tpu.vector_store %arg4[%c0_4, %c0_5, %c0_6], %16 {strides = array<i32>} : memref<1x8x384xf32, #tpu.memory_space<vmem>>, vector<1x8x384xf32>,
    %c0_7 = arith.constant 0 : index
    %c0_8 = arith.constant 0 : index
    %17 = vector.load %arg3[%c0_7, %c0_8] : memref<1x384xf32, #tpu.memory_space<vmem>>, vector<1x384xf32>
    %18 = vector.broadcast %17 : vector<1x384xf32> to vector<8x384xf32>
    %19 = arith.mulf %13, %18 : vector<8x384xf32>
    %cst_9 = arith.constant dense<0.000000e+00> : vector<8xf32>
    %20 = vector.multi_reduction <add>, %19, %cst_9 [1] : vector<8x384xf32> to vector<8xf32>
    %21 = vector.shape_cast %20 : vector<8xf32> to vector<8x1xf32>
    %22 = arith.mulf %13, %13 : vector<8x384xf32>
    %23 = vector.broadcast %17 : vector<1x384xf32> to vector<8x384xf32>
    %24 = arith.mulf %22, %23 : vector<8x384xf32>
    %cst_10 = arith.constant dense<0.000000e+00> : vector<8xf32>
    %25 = vector.multi_reduction <add>, %24, %cst_10 [1] : vector<8x384xf32> to vector<8xf32>
    %26 = vector.shape_cast %25 : vector<8xf32> to vector<8x1xf32>
    %27 = tpu.concatenate %21, %26 in 1 : vector<8x1xf32>, vector<8x1xf32> -> vector<8x2xf32>
    %c0_11 = arith.constant 0 : index
    %c0_12 = arith.constant 0 : index
    %c0_13 = arith.constant 0 : index
    %28 = vector.load %arg5[%c0_11, %c0_12, %c0_13] : memref<1x8x2xf32, #tpu.memory_space<vmem>>, vector<1x8x2xf32>
    %29 = vector.shape_cast %28 : vector<1x8x2xf32> to vector<8x2xf32>
    %30 = vector.shape_cast %27 : vector<8x2xf32> to vector<1x8x2xf32>
    tpu.vector_store %arg5[%c0_11, %c0_12, %c0_13], %30 {strides = array<i32>} : memref<1x8x2xf32, #tpu.memory_space<vmem>>, vector<1x8x2xf32>,
    return
  }
  func.func @transform_0(%arg0: i32) -> (i32, i32, i32) {
    %c0_i32 = arith.constant 0 : i32
    %c0_i32_0 = arith.constant 0 : i32
    %c0_i32_1 = arith.constant 0 : i32
    return %arg0, %c0_i32, %c0_i32_0 : i32, i32, i32
  }
  func.func @transform_1(%arg0: i32) -> (i32, i32) {
    %c0_i32 = arith.constant 0 : i32
    %c0_i32_0 = arith.constant 0 : i32
    %c0_i32_1 = arith.constant 0 : i32
    return %c0_i32, %c0_i32_0 : i32, i32
  }
  func.func @transform_2(%arg0: i32) -> (i32, i32) {
    %c0_i32 = arith.constant 0 : i32
    %c0_i32_0 = arith.constant 0 : i32
    %c0_i32_1 = arith.constant 0 : i32
    return %c0_i32, %c0_i32_0 : i32, i32
  }
  func.func @transform_3(%arg0: i32) -> (i32, i32, i32) {
    %c0_i32 = arith.constant 0 : i32
    %c0_i32_0 = arith.constant 0 : i32
    %c0_i32_1 = arith.constant 0 : i32
    return %arg0, %c0_i32, %c0_i32_0 : i32, i32, i32
  }
  func.func @transform_4(%arg0: i32) -> (i32, i32, i32) {
    %c0_i32 = arith.constant 0 : i32
    %c0_i32_0 = arith.constant 0 : i32
    %c0_i32_1 = arith.constant 0 : i32
    return %arg0, %c0_i32, %c0_i32_0 : i32, i32, i32
  }
}

</mosaic_0001>

<bundles_post_ra>
// kernel: conv_block_forward.5
= control target key start
LH: loop header
LB: loop body
LE: loop exit
PB: predicated region body
PF: predicated region fallthrough
CT: control target
= control target key end

     0   :  { %s405_s12 = smov 0   ;;  %s407_s13 = smov 0   ;;  %s444_s0 = inlined_call_operand.vmem [shape: f32[2,8,384], index: 0, kind: input, shape index: {}, may-alias: {0,3}]   ;;  %s445_s1 = inlined_call_operand.vmem [shape: f32[1,8,1], index: 1, kind: input, shape index: {}]   ;;  %s446_s2 = inlined_call_operand.vmem [shape: f32[1,8,1], index: 2, kind: input, shape index: {}]   ;;  %s447_s3 = inlined_call_operand.vmem [shape: f32[2,8,384], index: 3, kind: output, shape index: {}, may-alias: {0,3}]  }
   0x1   :  { %s409_s14 = smov 0  }
   0x2 LB: > { %s25_s15 = sadd.s32 1, %s378_s13  ;;  %p328_p0 = scmp.ge.s32.totalorder %s382_s14, 1  ;;  %s382_s14 = sphi %s409_s14, %s13_s14   ;;  %s378_s13 = sphi %s407_s13, %s449_s13   ;;  %s374_s12 = sphi %s405_s12, %s448_s12  }
   0x3   : > { %p27_p1 = scmp.ge.s32.totalorder %s25_s15, 2  ;;  %p158_p2 = scmp.lt.s32.totalorder %s382_s14, 3 }
   0x5   : > { %s451_s15 = smov (%p27_p1, %s25_s15), 0  ;;  %p159_p3 = pnand %p328_p0, %p158_p2 }
   0x6   : > { %v213_v0 = vld [vmem:[%s445_s1] sm:$0xff] (!%p159_p3)  ;;  %v384_v1 = vmov (!%p159_p3), 0   ;;  %p191_p4 = scmp.lt.s32.totalorder (!%p159_p3), %s374_s12, 1 }
   0x7   : > { %162 = sbr.rel (%p159_p3) target bundleno = 146 (0x92), region = 32  ;;  %359 = vset.pattern.permute.xlu0 (!%p159_p3), %v384_v1  ;;  %v222_v2 = vld [vmem:[%s446_s2] sm:$0xff] (!%p159_p3) }
   0x8   : > { %216 = vperm.xlu0 (!%p159_p3), %359, %v213_v0  }
   0xc   : > { %225 = vperm.xlu0 (!%p159_p3), %359, %v222_v2  }
   0xe   : > { %s453_s12 = smov (!%p191_p4, %s374_s12), 1 }
   0xf   : > { %s333_s20 = smul.u32 24, %s453_s12 }
  0x11   : > { %s198_s23 = scalar_lea.vmem %s444_s0, %s333_s20  ;;  %s208_s26 = scalar_lea.vmem %s447_s3, %s333_s20 }
  0x12   : > { %v210_v4 = vld [vmem:[%s198_s23] sm:$0xff]  ;;  %v211_v5 = vld [vmem:[%s198_s23 + $0x8] sm:$0xff]  ;;  %v212_v6 = vld [vmem:[%s198_s23 + $0x10] sm:$0xff] }
  0x87   : > { %v217_v3 = vpop.permute.xlu0 %216 }
  0x88   : > { %v219_v7 = vmul.f32 %v217_v3, %v210_v4  ;;  %v220_v8 = vmul.f32 %v217_v3, %v211_v5  ;;  %v221_v9 = vmul.f32 %v217_v3, %v212_v6 }
  0x8b   : > { %v226_v10 = vpop.permute.xlu0 %225 }
  0x8c   : > { %v228_v11 = vadd.f32 %v226_v10, %v219_v7  ;;  %v229_v12 = vadd.f32 %v226_v10, %v220_v8  ;;  %v230_v13 = vadd.f32 %v226_v10, %v221_v9 }
  0x8e   : > { %v231_v14 = vmax.f32 %v228_v11, 0.0  ;;  %v232_v15 = vmax.f32 %v229_v12, 0.0  ;;  %v233_v16 = vmax.f32 %v230_v13, 0.0 }
  0x90   : > { %234 = vst [vmem:[%s208_s26] sm:$0xff] %v231_v14  ;;  %235 = vst [vmem:[%s208_s26 + $0x8] sm:$0xff] %v232_v15 }
  0x91   : > { %236 = vst [vmem:[%s208_s26 + $0x10] sm:$0xff] %v233_v16 }
  0x92 PF: > { %s13_s14 = sadd.s32 1, %s382_s14   ;;  %s448_s12 = smov %s378_s13 }
  0x93   : > { %p10_p5 = scmp.ge.s32.totalorder %s13_s14, 4   ;;  %s449_s13 = smov %s451_s15 }
  0x95   :  { %12 = sbr.rel (!%p10_p5) target bundleno = 2 (0x2), region = 62 }

// kernel: conv_block_forward.3
= control target key start
LH: loop header
LB: loop body
LE: loop exit
PB: predicated region body
PF: predicated region fallthrough
CT: control target
= control target key end

     0   :  { %s707_s15 = smov 0   ;;  %s823_s0 = inlined_call_operand.vmem [shape: bf16[2,4,512], index: 0, kind: input, shape index: {}]   ;;  %s824_s1 = inlined_call_operand.vmem [shape: bf16[8,36], index: 1, kind: input, shape index: {}]   ;;  %s825_s2 = inlined_call_operand.vmem [shape: f32[1,384], index: 2, kind: input, shape index: {}]   ;;  %s826_s3 = inlined_call_operand.vmem [shape: f32[2,8,384], index: 3, kind: output, shape index: {0}]   ;;  %s827_s4 = inlined_call_operand.vmem [shape: f32[2,8,2], index: 4, kind: output, shape index: {1}]  }
   0x1 LB: > { %s610_s16 = sadd.s32 4294967295, %s668_s15   ;;  %p614_p0 = scmp.ge.s32.totalorder %s668_s15, 1  ;;  %s668_s15 = sphi %s707_s15, %s15_s15  }
   0x2   : > { %p165_p1 = scmp.lt.s32.totalorder %s668_s15, 3 }
   0x4   : > { %p166_p2 = pnand %p614_p0, %p165_p1 }
   0x5   : > { %p195_p3 = scmp.lt.s32.totalorder (!%p166_p2), %s610_s16, 1  ;;  %v216_v0 = vlaneseq (!%p166_p2)  ;;  %v670_v1 = vmov (!%p166_p2), 1983009808   ;;  %s671_s21 = smov (!%p166_p2), 126   ;;  %v676_v17 = vmov (!%p166_p2), 0.0   ;;  %v679_v19 = vmov (!%p166_p2), 0  }
   0x6   : > { %169 = sbr.rel (%p166_p2) target bundleno = 564 (0x234), region = 32  ;;  %v214_v2 = vunpack.c.l.s4 (!%p166_p2), %v670_v1  ;;  %s672_s22 = smov (!%p166_p2), 127   ;;  %629 = vmatprep.subr.bf16.mxu1 (!%p166_p2), %v676_v17  ;;  %434 = vmatprep.mubr.bf16.mxu0 (!%p166_p2), %v679_v19  ;;  %vm680_vm0 = vmmov (!%p166_p2), 0   ;;  %vm245_vm1 = vcmask (!%p166_p2), 1039360   ;;  %vm337_vm2 = vcmask (!%p166_p2), 1041408  }
   0x7   : > { %v717_v3 = vshrl.u32 (!%p166_p2), %v216_v0, 7  ;;  %s673_s23 = smov (!%p166_p2), 110   ;;  %s674_s24 = smov (!%p166_p2), 109   ;;  %635 = vmatprep.mubr.msk.bf16.mxu1 (!%p166_p2), %vm680_vm0, %v676_v17  ;;  %vm272_vm3 = vcmask (!%p166_p2), 900096   ;;  %vm259_vm4 = vcmask (!%p166_p2), 1031168   ;;  %vm354_vm5 = vcmask (!%p166_p2), 1045504  }
   0x8   : > { %v215_v4 = vunpack.c.0.s8 (!%p166_p2), %v214_v2  ;;  %s675_s25 = smov (!%p166_p2), 108   ;;  %s677_s26 = smov (!%p166_p2), 92   ;;  %vm347_vm6 = vcmask (!%p166_p2), 1043456   ;;  %vm297_vm7 = vcmask (!%p166_p2), 883712   ;;  %vm309_vm8 = vcmask (!%p166_p2), 752640  }
   0x9   : > { %s678_s27 = smov (!%p166_p2), 91   ;;  %s681_s28 = smov (!%p166_p2), 90   ;;  %vm285_vm9 = vcmask (!%p166_p2), 891904   ;;  %vm321_vm10 = vcmask (!%p166_p2), 744448   ;;  %vm333_vm11 = vcmask (!%p166_p2), 736256   ;;  %vm389_vm12 = vcmask (!%p166_p2), 293888  }
   0xa   : > { %v218_v5 = vsub.s32 (!%p166_p2), %v215_v4, %v717_v3  ;;  %vm520_vm13 = vcmask (!%p166_p2), 7168   ;;  %vm522_vm14 = vcmask (!%p166_p2), 15360  }
   0xd   : > { %s829_s16 = smov (!%p195_p3, %s610_s16), 1 }
   0xe   : > { %s624_s17 = sshll.u32 %s829_s16, 3  ;;  %s639_s5 = smul.u32 24, %s829_s16 }
   0xf   : > { %s199_s20 = scalar_lea.vmem %s823_s0, %s624_s17  ;;  %s208_s13 = scalar_lea.vmem %s827_s4, %s624_s17 }
  0x10   : > { %v210_v6 = vld [vmem:[%s199_s20] sm:$0xff]  ;;  %s204_s10 = scalar_lea.vmem %s826_s3, %s639_s5 }
  0x11   : > { %v726_v7 = vrot.slane %v210_v6, %v218_v5  ;;  %v228_v8 = vcombine.low %v210_v6, %v210_v6  ;;  %v212_v10 = vcombine.high %v210_v6, %v210_v6 }
  0x13   : > { %253 = vrot.lane.b32.xlu1 %v726_v7, %s671_s21  ;;  %241 = vrot.lane.b32.xlu0 %v726_v7, %s672_s22  ;;  %v235_v9 = vrot.slane %v228_v8, %v218_v5  ;;  %v249_v12 = vcombine.low %v726_v7, %v726_v7  ;;  %v733_v13 = vrot.slane %v212_v10, %v218_v5 }
  0x14   : > { %v227_v15 = vcombine.high %v726_v7, %v726_v7 }
  0x15   : > { %v236_v11 = vcombine.high %v235_v9, %v235_v9  ;;  %v250_v14 = vcombine.low %v733_v13, %v733_v13  ;;  %v263_v16 = vcombine.low %v235_v9, %v235_v9  ;;  %v276_v18 = vcombine.high %v733_v13, %v733_v13 }
  0x17   : > { %237 = vrot.lane.b32.xlu1 %v235_v9, %s672_s22  ;;  %266 = vrot.lane.b32.xlu0 %v235_v9, %s673_s23 }
  0x1b   : > { %239 = vrot.lane.b32.xlu0 %v236_v11, %s672_s22  ;;  %251 = vrot.lane.b32.xlu1 %v249_v12, %s671_s21 }
  0x1f   : > { %268 = vrot.lane.b32.xlu1 %v249_v12, %s673_s23  ;;  %255 = vrot.lane.b32.xlu0 %v250_v14, %s671_s21 }
  0x23   : > { %243 = vrot.lane.b32.xlu1 %v227_v15, %s672_s22  ;;  %264 = vrot.lane.b32.xlu0 %v263_v16, %s673_s23 }
  0x27   : > { %281 = vrot.lane.b32.xlu1 %v733_v13, %s674_s24  ;;  %279 = vrot.lane.b32.xlu0 %v227_v15, %s674_s24 }
  0x2b   : > { %293 = vrot.lane.b32.xlu1 %v726_v7, %s675_s25  ;;  %291 = vrot.lane.b32.xlu0 %v236_v11, %s675_s25 }
  0x2f   : > { %277 = vrot.lane.b32.xlu1 %v726_v7, %s674_s24  ;;  %257 = vrot.lane.b32.xlu0 %v733_v13, %s671_s21 }
  0x33   : > { %303 = vrot.lane.b32.xlu1 %v726_v7, %s677_s26  ;;  %289 = vrot.lane.b32.xlu0 %v235_v9, %s675_s25 }
  0x37   : > { %270 = vrot.lane.b32.xlu1 %v726_v7, %s673_s23  ;;  %305 = vrot.lane.b32.xlu0 %v250_v14, %s677_s26 }
  0x3b   : > { %315 = vrot.lane.b32.xlu1 %v235_v9, %s678_s27  ;;  %301 = vrot.lane.b32.xlu0 %v249_v12, %s677_s26 }
  0x3f   : > { %313 = vrot.lane.b32.xlu1 %v263_v16, %s678_s27  ;;  %317 = vrot.lane.b32.xlu0 %v249_v12, %s678_s27 }
  0x43   : > { %295 = vrot.lane.b32.xlu1 %v227_v15, %s675_s25  ;;  %283 = vrot.lane.b32.xlu0 %v276_v18, %s674_s24 }
  0x47   : > { %319 = vrot.lane.b32.xlu1 %v726_v7, %s678_s27  ;;  %307 = vrot.lane.b32.xlu0 %v733_v13, %s677_s26 }
  0x4b   : > { %327 = vrot.lane.b32.xlu1 %v227_v15, %s681_s28  ;;  %325 = vrot.lane.b32.xlu0 %v726_v7, %s681_s28 }
  0x4f   : > { %331 = vrot.lane.b32.xlu1 %v276_v18, %s681_s28  ;;  %329 = vrot.lane.b32.xlu0 %v733_v13, %s681_s28 }
  0x85   : > { %v254_v20 = vpop.permute.xlu1 %253  ;;  %v242_v21 = vpop.permute.xlu0 %241 }
  0x89   : > { %v238_v22 = vpop.permute.xlu1 %237  ;;  %v267_v23 = vpop.permute.xlu0 %266 }
  0x8d   : > { %v240_v24 = vpop.permute.xlu0 %239  ;;  %v252_v25 = vpop.permute.xlu1 %251 }
  0x8e   : > { %v247_v26 = vsel %vm245_vm1, %v240_v24, %v242_v21  ;;  %v246_v27 = vsel %vm245_vm1, %v238_v22, %v240_v24  ;;  %v260_v34 = vsel %vm259_vm4, %v252_v25, %v254_v20 }
  0x8f   : > { %v343_v30 = vsel %vm337_vm2, %v227_v15, %v247_v26  ;;  %v340_v33 = vsel %vm337_vm2, %v726_v7, %v246_v27 }
  0x90   : > { %v349_v40 = vsel %vm347_vm6, %v340_v33, %v260_v34  ;;  %v388_v34 = vld [vmem:[%s824_s1] sm:$0xf] }
  0x91   : > { %v269_v28 = vpop.permute.xlu1 %268  ;;  %v256_v29 = vpop.permute.xlu0 %255 }
  0x92   : > { %v274_v31 = vsel %vm272_vm3, %v267_v23, %v269_v28  ;;  %v261_v32 = vsel %vm259_vm4, %v254_v20, %v256_v29 }
  0x93   : > { %v351_v35 = vsel %vm347_vm6, %v343_v30, %v261_v32 }
  0x94   : > { %v359_v36 = vsel %vm354_vm5, %v351_v35, %v274_v31  ;;  %v486_v35 = vld [vmem:[%s825_s2] sm:$0x7] }
  0x95   : > { %v244_v37 = vpop.permute.xlu1 %243  ;;  %402 = vmatprep.subr.bf16.mxu0 %v359_v36  ;;  %v265_v38 = vpop.permute.xlu0 %264  ;;  %v494_v36 = vsub.s32 1, %v717_v3 }
  0x96   : > { %v273_v39 = vsel %vm272_vm3, %v265_v38, %v267_v23  ;;  %v248_v50 = vsel %vm245_vm1, %v242_v21, %v244_v37  ;;  %v498_v37 = vsub.s32 2, %v717_v3 }
  0x97   : > { %v356_v41 = vsel %vm354_vm5, %v349_v40, %v273_v39  ;;  %v346_v52 = vsel %vm337_vm2, %v733_v13, %v248_v50  ;;  %v495_v39 = vrot.slane %v486_v35, %v494_v36 }
  0x98   : > { %403 = vmatpush1.bf16.msra.mxu0 %v356_v41  ;;  %v499_v40 = vrot.slane %v486_v35, %v498_v37 }
  0x99   : > { %v282_v42 = vpop.permute.xlu1 %281  ;;  %v280_v43 = vpop.permute.xlu0 %279 }
  0x9a   : > { %v287_v0 = vsel %vm285_vm9, %v280_v43, %v282_v42 }
  0x9d   : > { %v294_v44 = vpop.permute.xlu1 %293  ;;  %v292_v45 = vpop.permute.xlu0 %291 }
  0x9e   : > { %v299_v60 = vsel %vm297_vm7, %v292_v45, %v294_v44 }
  0x9f   : > { %v369_v2 = vsel %vm337_vm2, %v287_v0, %v299_v60 }
  0xa1   : > { %v278_v46 = vpop.permute.xlu1 %277  ;;  %v258_v47 = vpop.permute.xlu0 %257 }
  0xa2   : > { %v262_v51 = vsel %vm259_vm4, %v256_v29, %v258_v47  ;;  %v286_v1 = vsel %vm285_vm9, %v278_v46, %v280_v43 }
  0xa3   : > { %v353_v56 = vsel %vm347_vm6, %v346_v52, %v262_v51 }
  0xa5   : > { %v304_v48 = vpop.permute.xlu1 %303  ;;  %v290_v49 = vpop.permute.xlu0 %289 }
  0xa6   : > { %v298_v61 = vsel %vm297_vm7, %v290_v49, %v292_v45 }
  0xa7   : > { %v366_v4 = vsel %vm337_vm2, %v286_v1, %v298_v61 }
  0xa9   : > { %v271_v53 = vpop.permute.xlu1 %270  ;;  %v306_v54 = vpop.permute.xlu0 %305 }
  0xaa   : > { %v275_v55 = vsel %vm272_vm3, %v269_v28, %v271_v53  ;;  %v311_v62 = vsel %vm309_vm8, %v304_v48, %v306_v54 }
  0xab   : > { %v362_v57 = vsel %vm354_vm5, %v353_v56, %v275_v55  ;;  %v376_v9 = vsel %vm347_vm6, %v369_v2, %v311_v62 }
  0xac   : > { %630 = vmatpush3.bf16.msra.mxu1 %v362_v57 }
  0xad   : > { %v316_v58 = vpop.permute.xlu1 %315  ;;  %v302_v59 = vpop.permute.xlu0 %301  ;;  %631 = vmatprep.subr.bf16.mxu1 %v676_v17 }
  0xae   : > { %v310_v63 = vsel %vm309_vm8, %v302_v59, %v304_v48 }
  0xaf   : > { %v374_v10 = vsel %vm347_vm6, %v366_v4, %v310_v63 }
  0xb1   : > { %v314_v5 = vpop.permute.xlu1 %313  ;;  %v318_v6 = vpop.permute.xlu0 %317 }
  0xb2   : > { %v322_v7 = vsel %vm321_vm10, %v314_v5, %v316_v58  ;;  %v323_v8 = vsel %vm321_vm10, %v316_v58, %v318_v6 }
  0xb3   : > { %v383_v11 = vsel %vm354_vm5, %v376_v9, %v323_v8  ;;  %v380_v12 = vsel %vm354_vm5, %v374_v10, %v322_v7 }
  0xb4   : > { %404 = vmatprep.subr.bf16.mxu0 %v383_v11 }
  0xb5   : > { %v296_v13 = vpop.permute.xlu1 %295  ;;  %405 = vmatpush1.bf16.msra.mxu0 %v380_v12  ;;  %v284_v14 = vpop.permute.xlu0 %283 }
  0xb6   : > { %v300_v15 = vsel %vm297_vm7, %v294_v44, %v296_v13  ;;  %v288_v16 = vsel %vm285_vm9, %v282_v42, %v284_v14 }
  0xb7   : > { %v372_v20 = vsel %vm337_vm2, %v288_v16, %v300_v15 }
  0xb9   : > { %v320_v18 = vpop.permute.xlu1 %319  ;;  %v308_v19 = vpop.permute.xlu0 %307 }
  0xba   : > { %v324_v21 = vsel %vm321_vm10, %v318_v6, %v320_v18  ;;  %v312_v22 = vsel %vm309_vm8, %v306_v54, %v308_v19 }
  0xbb   : > { %v378_v23 = vsel %vm347_vm6, %v372_v20, %v312_v22 }
  0xbc   : > { %v386_v24 = vsel %vm354_vm5, %v378_v23, %v324_v21 }
  0xbd   : > { %v328_v25 = vpop.permute.xlu1 %327  ;;  %632 = vmatpush3.bf16.msra.mxu1 %v386_v24  ;;  %v326_v26 = vpop.permute.xlu0 %325 }
  0xbe   : > { %633 = vmatprep.subr.bf16.mxu1 %v676_v17  ;;  %v334_v27 = vsel %vm333_vm11, %v326_v26, %v328_v25  ;;  %v490_v17 = vsub.s32 0, %v717_v3 }
  0xbf   : > { %v394_v32 = vsel %vm337_vm2, %v334_v27, 0 }
  0xc0   : > { %v491_v38 = vrot.slane %v486_v35, %v490_v17 }
  0xc1   : > { %v332_v28 = vpop.permute.xlu1 %331  ;;  %v330_v29 = vpop.permute.xlu0 %329 }
  0xc2   : > { %v335_v30 = vsel %vm333_vm11, %v328_v25, %v330_v29  ;;  %v336_v31 = vsel %vm333_vm11, %v330_v29, %v332_v28 }
  0xc3   : > { %619 = vmatprep.subr.msk.bf16.mxu0 %vm337_vm2, %v335_v30  ;;  %v400_v33 = vsel %vm337_vm2, %v336_v31, 0 }
  0xc4   : > { %407 = vmatpush1.bf16.msra.mxu0 %v394_v32  ;;  %634 = vmatpush3.bf16.msra.mxu1 %v400_v33 }
  0xc7   : > { %620 = vmatmul.mubr.msk.bf16.vlgmr.msra.gmra.mrb[0].mxu0 %vm389_vm12, %v388_v34  ;;  %636 = vmatmul.mubr.msk.bf16.vlgmr.msra.gmra.mrb[0].mxu1 %vm389_vm12, %v388_v34 }
 0x19a   : > { %v436_v41 = vpop.f32.mrb[0].mxu0  ;;  %v477_v42 = vpop.f32.mrb[0].mxu1 }
 0x19b   : > { %483 = vst [vmem:[%s204_s10] sm:$0xff] %v436_v41  ;;  %v503_v43 = vmul.f32 %v491_v38, %v436_v41  ;;  %v510_v44 = vmul.f32 %v436_v41, %v436_v41  ;;  %485 = vst [vmem:[%s204_s10 + $0x10] sm:$0xff] %v477_v42  ;;  %v512_v45 = vmul.f32 %v477_v42, %v477_v42  ;;  %v438_v46 = vpop.f32.mrb[1].mxu0  ;;  %v637_v47 = vpop.f32.mrb[1].mxu1 }
 0x19c   : > { %484 = vst [vmem:[%s204_s10 + $0x8] sm:$0xff] %v438_v46  ;;  %v504_v48 = vmul.f32 %v495_v39, %v438_v46  ;;  %v511_v49 = vmul.f32 %v438_v46, %v438_v46  ;;  %v440_v3 = vpop.f32.mrb[2].mxu0  ;;  %v480_v50 = vpop.f32.mrb[2].mxu1  ;;  %v505_v51 = vmul.f32 %v499_v40, %v477_v42 }
 0x19d   : > { %v441_v52 = vpop.f32.mrb[3].mxu0  ;;  %v638_v53 = vpop.f32.mrb[3].mxu1  ;;  %v513_v54 = vmul.f32 %v510_v44, %v491_v38  ;;  %v515_v57 = vmul.f32 %v512_v45, %v499_v40 }
 0x19e   : > { %v506_v55 = vadd.f32 %v504_v48, %v503_v43  ;;  %v514_v56 = vmul.f32 %v511_v49, %v495_v39 }
 0x1a0   : > { %v507_v58 = vadd.f32 %v506_v55, %v505_v51  ;;  %v516_v59 = vadd.f32 %v514_v56, %v513_v54 }
 0x1a2   : > { %508 = vadd.xlane.f32.xlu0 %v507_v58  ;;  %v517_v60 = vadd.f32 %v516_v59, %v515_v57 }
 0x1a4   : > { %518 = vadd.xlane.f32.xlu1 %v517_v60 }
 0x22f   : > { %v509_v61 = vpop.xlane.xlu0 %508 }
 0x231   : > { %v519_v62 = vpop.xlane.xlu1 %518 }
 0x232   : > { %v521_v63 = vsel %vm520_vm13, %v509_v61, %v519_v62 }
 0x233   : > { %523 = vst.msk [vmem:[%s208_s13] sm:$0xff] %vm522_vm14, %v521_v63 }
 0x234 PF: > { %s15_s15 = sadd.s32 1, %s668_s15  }
 0x235   : > { %p12_p4 = scmp.ge.s32.totalorder %s15_s15, 4  }
 0x237   :  { %14 = sbr.rel (!%p12_p4) target bundleno = 1 (0x1), region = 74 }

// kernel: conv_block_forward.4
= control target key start
LH: loop header
LB: loop body
LE: loop exit
PB: predicated region body
PF: predicated region fallthrough
CT: control target
= control target key end

     0   :  { %s696_s15 = smov 0   ;;  %s766_s0 = inlined_call_operand.vmem [shape: bf16[2,8,512], index: 0, kind: input, shape index: {}]   ;;  %s767_s1 = inlined_call_operand.vmem [shape: bf16[8,72], index: 1, kind: input, shape index: {}]   ;;  %s768_s2 = inlined_call_operand.vmem [shape: f32[1,384], index: 2, kind: input, shape index: {}]   ;;  %s769_s3 = inlined_call_operand.vmem [shape: f32[2,8,384], index: 3, kind: output, shape index: {0}]   ;;  %s770_s4 = inlined_call_operand.vmem [shape: f32[2,8,2], index: 4, kind: output, shape index: {1}]  }
   0x1 LB: > { %s589_s16 = sadd.s32 4294967295, %s658_s15   ;;  %p593_p0 = scmp.ge.s32.totalorder %s658_s15, 1  ;;  %s658_s15 = sphi %s696_s15, %s15_s15  }
   0x2   : > { %p165_p1 = scmp.lt.s32.totalorder %s658_s15, 3 }
   0x4   : > { %p166_p2 = pnand %p593_p0, %p165_p1 }
   0x5   : > { %p195_p3 = scmp.lt.s32.totalorder (!%p166_p2), %s589_s16, 1  ;;  %v660_v0 = vmov (!%p166_p2), 0.0   ;;  %s661_s21 = smov (!%p166_p2), 127   ;;  %v668_v7 = vmov (!%p166_p2), 0   ;;  %vm669_vm0 = vmmov (!%p166_p2), 0   ;;  %vm230_vm1 = vcmask (!%p166_p2), 1039360  }
   0x6   : > { %169 = sbr.rel (%p166_p2) target bundleno = 564 (0x234), region = 32  ;;  %614 = vmatprep.subr.bf16.mxu1 (!%p166_p2), %v660_v0  ;;  %s662_s22 = smov (!%p166_p2), 126   ;;  %413 = vmatprep.mubr.bf16.mxu0 (!%p166_p2), %v668_v7  ;;  %vm318_vm2 = vcmask (!%p166_p2), 1043456   ;;  %vm242_vm3 = vcmask (!%p166_p2), 1031168   ;;  %vm254_vm4 = vcmask (!%p166_p2), 900096   ;;  %vm266_vm5 = vcmask (!%p166_p2), 891904  }
   0x7   : > { %s663_s23 = smov (!%p166_p2), 110   ;;  %s664_s24 = smov (!%p166_p2), 109   ;;  %624 = vmatprep.mubr.msk.bf16.mxu1 (!%p166_p2), %vm669_vm0, %v660_v0  ;;  %vm278_vm6 = vcmask (!%p166_p2), 883712   ;;  %vm290_vm7 = vcmask (!%p166_p2), 752640   ;;  %vm302_vm8 = vcmask (!%p166_p2), 744448   ;;  %vm314_vm9 = vcmask (!%p166_p2), 736256  }
   0x8   : > { %s665_s25 = smov (!%p166_p2), 108   ;;  %s666_s26 = smov (!%p166_p2), 92   ;;  %vm368_vm10 = vcmask (!%p166_p2), 588800   ;;  %vm499_vm11 = vcmask (!%p166_p2), 7168   ;;  %vm501_vm12 = vcmask (!%p166_p2), 15360  }
   0x9   : > { %s667_s27 = smov (!%p166_p2), 91   ;;  %s670_s28 = smov (!%p166_p2), 90  }
   0xd   : > { %s772_s16 = smov (!%p195_p3, %s589_s16), 1 }
   0xe   : > { %s607_s17 = sshll.u32 %s772_s16, 4  ;;  %s628_s5 = smul.u32 24, %s772_s16 }
   0xf   : > { %s199_s20 = scalar_lea.vmem %s766_s0, %s607_s17  ;;  %s597_s11 = sshll.u32 %s772_s16, 3 }
  0x10   : > { %v210_v1 = vld [vmem:[%s199_s20] sm:$0xff]  ;;  %v211_v2 = vld [vmem:[%s199_s20 + $0x8] sm:$0xff]  ;;  %s204_s10 = scalar_lea.vmem %s769_s3, %s628_s5  ;;  %s208_s14 = scalar_lea.vmem %s770_s4, %s597_s11 }
  0x11   : > { %v599_v3 = vcombine.high %v210_v1, %v210_v1  ;;  %v598_v4 = vcombine.low %v210_v1, %v210_v1  ;;  %v600_v5 = vcombine.low %v211_v2, %v211_v2  ;;  %v601_v6 = vcombine.high %v211_v2, %v211_v2 }
  0x13   : > { %224 = vrot.lane.b32.xlu0 %v599_v3, %s661_s21  ;;  %222 = vrot.lane.b32.xlu1 %v598_v4, %s661_s21 }
  0x17   : > { %226 = vrot.lane.b32.xlu0 %v600_v5, %s661_s21  ;;  %228 = vrot.lane.b32.xlu1 %v601_v6, %s661_s21 }
  0x1b   : > { %236 = vrot.lane.b32.xlu0 %v599_v3, %s662_s22  ;;  %238 = vrot.lane.b32.xlu1 %v600_v5, %s662_s22 }
  0x1f   : > { %248 = vrot.lane.b32.xlu0 %v599_v3, %s663_s23  ;;  %250 = vrot.lane.b32.xlu1 %v600_v5, %s663_s23 }
  0x23   : > { %234 = vrot.lane.b32.xlu0 %v598_v4, %s662_s22  ;;  %246 = vrot.lane.b32.xlu1 %v598_v4, %s663_s23 }
  0x27   : > { %240 = vrot.lane.b32.xlu0 %v601_v6, %s662_s22  ;;  %252 = vrot.lane.b32.xlu1 %v601_v6, %s663_s23 }
  0x2b   : > { %260 = vrot.lane.b32.xlu0 %v599_v3, %s664_s24  ;;  %262 = vrot.lane.b32.xlu1 %v600_v5, %s664_s24 }
  0x2f   : > { %272 = vrot.lane.b32.xlu0 %v599_v3, %s665_s25  ;;  %274 = vrot.lane.b32.xlu1 %v600_v5, %s665_s25 }
  0x33   : > { %258 = vrot.lane.b32.xlu0 %v598_v4, %s664_s24  ;;  %270 = vrot.lane.b32.xlu1 %v598_v4, %s665_s25 }
  0x37   : > { %264 = vrot.lane.b32.xlu0 %v601_v6, %s664_s24  ;;  %276 = vrot.lane.b32.xlu1 %v601_v6, %s665_s25 }
  0x3b   : > { %284 = vrot.lane.b32.xlu0 %v599_v3, %s666_s26  ;;  %286 = vrot.lane.b32.xlu1 %v600_v5, %s666_s26 }
  0x3f   : > { %296 = vrot.lane.b32.xlu0 %v599_v3, %s667_s27  ;;  %298 = vrot.lane.b32.xlu1 %v600_v5, %s667_s27 }
  0x43   : > { %282 = vrot.lane.b32.xlu0 %v598_v4, %s666_s26  ;;  %294 = vrot.lane.b32.xlu1 %v598_v4, %s667_s27 }
  0x47   : > { %288 = vrot.lane.b32.xlu0 %v601_v6, %s666_s26  ;;  %300 = vrot.lane.b32.xlu1 %v601_v6, %s667_s27 }
  0x4b   : > { %306 = vrot.lane.b32.xlu0 %v598_v4, %s670_s28  ;;  %308 = vrot.lane.b32.xlu1 %v599_v3, %s670_s28 }
  0x4f   : > { %310 = vrot.lane.b32.xlu0 %v600_v5, %s670_s28  ;;  %312 = vrot.lane.b32.xlu1 %v601_v6, %s670_s28 }
  0x85   : > { %v225_v8 = vpop.permute.xlu0 %224  ;;  %v223_v9 = vpop.permute.xlu1 %222 }
  0x86   : > { %v231_v10 = vsel %vm230_vm1, %v223_v9, %v225_v8 }
  0x87   : > { %v321_v17 = vsel %vm318_vm2, %v598_v4, %v231_v10 }
  0x89   : > { %v227_v11 = vpop.permute.xlu0 %226  ;;  %v229_v12 = vpop.permute.xlu1 %228 }
  0x8a   : > { %v232_v13 = vsel %vm230_vm1, %v225_v8, %v227_v11  ;;  %v233_v14 = vsel %vm230_vm1, %v227_v11, %v229_v12 }
  0x8b   : > { %v325_v15 = vsel %vm318_vm2, %v599_v3, %v232_v13  ;;  %v329_v16 = vsel %vm318_vm2, %v600_v5, %v233_v14 }
  0x8c   : > { %381 = vmatprep.subr.bf16.mxu0 %v325_v15  ;;  %615 = vmatpush3.bf16.msra.mxu1 %v329_v16  ;;  %v367_v15 = vld [vmem:[%s767_s1] sm:$0xf] }
  0x8d   : > { %v237_v18 = vpop.permute.xlu0 %236  ;;  %382 = vmatpush1.bf16.msra.mxu0 %v321_v17  ;;  %v239_v19 = vpop.permute.xlu1 %238  ;;  %616 = vmatprep.subr.bf16.mxu1 %v660_v0 }
  0x8e   : > { %v244_v22 = vsel %vm242_vm3, %v237_v18, %v239_v19 }
  0x91   : > { %v249_v20 = vpop.permute.xlu0 %248  ;;  %v251_v21 = vpop.permute.xlu1 %250 }
  0x92   : > { %v256_v23 = vsel %vm254_vm4, %v249_v20, %v251_v21 }
  0x93   : > { %v337_v24 = vsel %vm318_vm2, %v244_v22, %v256_v23 }
  0x94   : > { %383 = vmatprep.subr.bf16.mxu0 %v337_v24 }
  0x95   : > { %v235_v25 = vpop.permute.xlu0 %234  ;;  %v247_v26 = vpop.permute.xlu1 %246 }
  0x96   : > { %v243_v27 = vsel %vm242_vm3, %v235_v25, %v237_v18  ;;  %v255_v28 = vsel %vm254_vm4, %v247_v26, %v249_v20  ;;  %v465_v18 = vld [vmem:[%s768_s2] sm:$0x7] }
  0x97   : > { %v333_v29 = vsel %vm318_vm2, %v243_v27, %v255_v28 }
  0x98   : > { %384 = vmatpush1.bf16.msra.mxu0 %v333_v29 }
  0x99   : > { %v241_v30 = vpop.permute.xlu0 %240  ;;  %v253_v31 = vpop.permute.xlu1 %252 }
  0x9a   : > { %v245_v32 = vsel %vm242_vm3, %v239_v19, %v241_v30  ;;  %v257_v33 = vsel %vm254_vm4, %v251_v21, %v253_v31 }
  0x9b   : > { %v341_v34 = vsel %vm318_vm2, %v245_v32, %v257_v33 }
  0x9c   : > { %617 = vmatpush3.bf16.msra.mxu1 %v341_v34 }
  0x9d   : > { %v261_v35 = vpop.permute.xlu0 %260  ;;  %v263_v36 = vpop.permute.xlu1 %262  ;;  %618 = vmatprep.subr.bf16.mxu1 %v660_v0 }
  0x9e   : > { %v268_v39 = vsel %vm266_vm5, %v261_v35, %v263_v36 }
  0xa1   : > { %v273_v37 = vpop.permute.xlu0 %272  ;;  %v275_v38 = vpop.permute.xlu1 %274 }
  0xa2   : > { %v280_v40 = vsel %vm278_vm6, %v273_v37, %v275_v38 }
  0xa3   : > { %v349_v41 = vsel %vm318_vm2, %v268_v39, %v280_v40 }
  0xa4   : > { %385 = vmatprep.subr.bf16.mxu0 %v349_v41 }
  0xa5   : > { %v259_v42 = vpop.permute.xlu0 %258  ;;  %v271_v43 = vpop.permute.xlu1 %270 }
  0xa6   : > { %v267_v44 = vsel %vm266_vm5, %v259_v42, %v261_v35  ;;  %v279_v45 = vsel %vm278_vm6, %v271_v43, %v273_v37 }
  0xa7   : > { %v345_v46 = vsel %vm318_vm2, %v267_v44, %v279_v45 }
  0xa8   : > { %386 = vmatpush1.bf16.msra.mxu0 %v345_v46 }
  0xa9   : > { %v265_v47 = vpop.permute.xlu0 %264  ;;  %v277_v48 = vpop.permute.xlu1 %276 }
  0xaa   : > { %v269_v49 = vsel %vm266_vm5, %v263_v36, %v265_v47  ;;  %v281_v50 = vsel %vm278_vm6, %v275_v38, %v277_v48 }
  0xab   : > { %v353_v51 = vsel %vm318_vm2, %v269_v49, %v281_v50 }
  0xac   : > { %619 = vmatpush3.bf16.msra.mxu1 %v353_v51 }
  0xad   : > { %v285_v52 = vpop.permute.xlu0 %284  ;;  %v287_v53 = vpop.permute.xlu1 %286  ;;  %620 = vmatprep.subr.bf16.mxu1 %v660_v0 }
  0xae   : > { %v292_v56 = vsel %vm290_vm7, %v285_v52, %v287_v53 }
  0xb1   : > { %v297_v54 = vpop.permute.xlu0 %296  ;;  %v299_v55 = vpop.permute.xlu1 %298 }
  0xb2   : > { %v304_v57 = vsel %vm302_vm8, %v297_v54, %v299_v55 }
  0xb3   : > { %v361_v58 = vsel %vm318_vm2, %v292_v56, %v304_v57 }
  0xb4   : > { %387 = vmatprep.subr.bf16.mxu0 %v361_v58 }
  0xb5   : > { %v283_v59 = vpop.permute.xlu0 %282  ;;  %v295_v60 = vpop.permute.xlu1 %294 }
  0xb6   : > { %v291_v61 = vsel %vm290_vm7, %v283_v59, %v285_v52  ;;  %v303_v62 = vsel %vm302_vm8, %v295_v60, %v297_v54 }
  0xb7   : > { %v357_v63 = vsel %vm318_vm2, %v291_v61, %v303_v62 }
  0xb8   : > { %388 = vmatpush1.bf16.msra.mxu0 %v357_v63 }
  0xb9   : > { %v289_v1 = vpop.permute.xlu0 %288  ;;  %v301_v2 = vpop.permute.xlu1 %300 }
  0xba   : > { %v293_v3 = vsel %vm290_vm7, %v287_v53, %v289_v1  ;;  %v305_v4 = vsel %vm302_vm8, %v299_v55, %v301_v2 }
  0xbb   : > { %v365_v5 = vsel %vm318_vm2, %v293_v3, %v305_v4 }
  0xbc   : > { %621 = vmatpush3.bf16.msra.mxu1 %v365_v5 }
  0xbd   : > { %v307_v6 = vpop.permute.xlu0 %306  ;;  %v309_v7 = vpop.permute.xlu1 %308  ;;  %622 = vmatprep.subr.bf16.mxu1 %v660_v0  ;;  %v467_v0 = vlaneseq }
  0xbe   : > { %v315_v8 = vsel %vm314_vm9, %v307_v6, %v309_v7 }
  0xbf   : > { %v373_v13 = vsel %vm318_vm2, %v315_v8, 0  ;;  %v468_v16 = vshrl.u32 %v467_v0, 7 }
  0xc1   : > { %v311_v9 = vpop.permute.xlu0 %310  ;;  %v313_v10 = vpop.permute.xlu1 %312  ;;  %v469_v17 = vsub.s32 0, %v468_v16  ;;  %v473_v19 = vsub.s32 1, %v468_v16  ;;  %v477_v20 = vsub.s32 2, %v468_v16 }
  0xc2   : > { %v316_v11 = vsel %vm314_vm9, %v309_v7, %v311_v9  ;;  %v317_v12 = vsel %vm314_vm9, %v311_v9, %v313_v10 }
  0xc3   : > { %602 = vmatprep.subr.msk.bf16.mxu0 %vm318_vm2, %v316_v11  ;;  %v379_v14 = vsel %vm318_vm2, %v317_v12, 0  ;;  %v470_v21 = vrot.slane %v465_v18, %v469_v17  ;;  %v474_v22 = vrot.slane %v465_v18, %v473_v19  ;;  %v478_v23 = vrot.slane %v465_v18, %v477_v20 }
  0xc4   : > { %390 = vmatpush1.bf16.msra.mxu0 %v373_v13  ;;  %623 = vmatpush3.bf16.msra.mxu1 %v379_v14 }
  0xc7   : > { %603 = vmatmul.mubr.msk.bf16.vlgmr.msra.gmra.mrb[0].mxu0 %vm368_vm10, %v367_v15  ;;  %625 = vmatmul.mubr.msk.bf16.vlgmr.msra.gmra.mrb[0].mxu1 %vm368_vm10, %v367_v15 }
 0x19a   : > { %v415_v24 = vpop.f32.mrb[0].mxu0  ;;  %v456_v25 = vpop.f32.mrb[0].mxu1 }
 0x19b   : > { %462 = vst [vmem:[%s204_s10] sm:$0xff] %v415_v24  ;;  %v482_v26 = vmul.f32 %v470_v21, %v415_v24  ;;  %v489_v27 = vmul.f32 %v415_v24, %v415_v24  ;;  %464 = vst [vmem:[%s204_s10 + $0x10] sm:$0xff] %v456_v25  ;;  %v491_v28 = vmul.f32 %v456_v25, %v456_v25  ;;  %v417_v29 = vpop.f32.mrb[1].mxu0  ;;  %v626_v30 = vpop.f32.mrb[1].mxu1 }
 0x19c   : > { %463 = vst [vmem:[%s204_s10 + $0x8] sm:$0xff] %v417_v29  ;;  %v483_v31 = vmul.f32 %v474_v22, %v417_v29  ;;  %v490_v32 = vmul.f32 %v417_v29, %v417_v29  ;;  %v419_v33 = vpop.f32.mrb[2].mxu0  ;;  %v459_v34 = vpop.f32.mrb[2].mxu1  ;;  %v484_v35 = vmul.f32 %v478_v23, %v456_v25 }
 0x19d   : > { %v420_v36 = vpop.f32.mrb[3].mxu0  ;;  %v627_v37 = vpop.f32.mrb[3].mxu1  ;;  %v492_v38 = vmul.f32 %v489_v27, %v470_v21  ;;  %v494_v41 = vmul.f32 %v491_v28, %v478_v23 }
 0x19e   : > { %v485_v39 = vadd.f32 %v483_v31, %v482_v26  ;;  %v493_v40 = vmul.f32 %v490_v32, %v474_v22 }
 0x1a0   : > { %v486_v42 = vadd.f32 %v485_v39, %v484_v35  ;;  %v495_v43 = vadd.f32 %v493_v40, %v492_v38 }
 0x1a2   : > { %487 = vadd.xlane.f32.xlu0 %v486_v42  ;;  %v496_v44 = vadd.f32 %v495_v43, %v494_v41 }
 0x1a4   : > { %497 = vadd.xlane.f32.xlu1 %v496_v44 }
 0x22f   : > { %v488_v45 = vpop.xlane.xlu0 %487 }
 0x231   : > { %v498_v46 = vpop.xlane.xlu1 %497 }
 0x232   : > { %v500_v47 = vsel %vm499_vm11, %v488_v45, %v498_v46 }
 0x233   : > { %502 = vst.msk [vmem:[%s208_s14] sm:$0xff] %vm501_vm12, %v500_v47 }
 0x234 PF: > { %s15_s15 = sadd.s32 1, %s658_s15  }
 0x235   : > { %p12_p4 = scmp.ge.s32.totalorder %s15_s15, 4  }
 0x237   :  { %14 = sbr.rel (!%p12_p4) target bundleno = 1 (0x1), region = 74 }

</bundles_post_ra>
